<compile_context>
chip_gen: v7x
topology: tpu7x:2x2x1
jax: 0.10.0
libtpu: 0.0.40
codegen_flags: <defaults>
</compile_context>

<pallas_src>
import functools
from typing import NamedTuple

import jax
import jax.numpy as jnp
from jax import lax
from jax.experimental import pallas as pl
from jax.experimental.pallas import tpu as pltpu

_MIB = 1024 * 1024


def _round_up(n, m):
    return ((n + m - 1) // m) * m


# --------------------------------------------------------------------------------------
# Dropout randomness helpers
# --------------------------------------------------------------------------------------
def _uniform_from_bits(bits):
    """Map random bits -> f32 uniform in [0, 1).  Uses only the low 24 bits so it is
    exact in f32 and independent of whether `bits` is int32 or uint32."""
    b24 = jnp.bitwise_and(bits, jnp.asarray(0x00FFFFFF, dtype=bits.dtype))
    return b24.astype(jnp.float32) * jnp.float32(1.0 / (1 << 24))


def _hash_random_bits(shape, seed, i, k):
    """Counter-based hash PRNG using only jnp ops.  Only used on non-TPU backends
    (CPU interpret / emulation) where pltpu.prng_seed has no lowering."""
    r = lax.broadcasted_iota(jnp.uint32, shape, 0)
    c = lax.broadcasted_iota(jnp.uint32, shape, 1)
    s = (seed.astype(jnp.uint32) * jnp.uint32(0x9E3779B1)
         + i.astype(jnp.uint32) * jnp.uint32(0x85EBCA77)
         + k.astype(jnp.uint32) * jnp.uint32(0xC2B2AE3D))
    x = (r * jnp.uint32(0x27D4EB2F)) ^ (c * jnp.uint32(0x165667B1)) ^ s
    x = x ^ (x >> 16)
    x = x * jnp.uint32(0x7FEB352D)
    x = x ^ (x >> 15)
    x = x * jnp.uint32(0x846CA68B)
    x = x ^ (x >> 16)
    return x


# --------------------------------------------------------------------------------------
# Kernel
# --------------------------------------------------------------------------------------
def _ffn_kernel(seed_ref, x_ref, w1_ref, b1_ref, w2_ref, b2_ref, o_ref, *scratch,
                dropout_rate: float, num_ff_chunks: int, acc_into_out: bool,
                use_tpu_prng: bool):
    """One (row-tile i, d_ff-chunk k) grid step.

    x_ref  : [TM, DM]      (VMEM, compute dtype)   DM = padded d_model
    w1_ref : [DM, TF]      (VMEM, compute dtype)   TF = d_ff chunk
    b1_ref : [1, TF]       (VMEM, f32)
    w2_ref : [TF, DM]      (VMEM, compute dtype)
    b2_ref : [1, DM]       (VMEM, f32)
    o_ref  : [TM, DM]      (VMEM, out dtype; doubles as f32 accumulator when
                            acc_into_out — it is resident across the k axis)
    scratch: optional [TM, DM] f32 accumulator (only for non-f32 outputs, nk > 1)
    seed_ref: [1] int32    (SMEM scalar prefetch)
    """
    k = pl.program_id(1)

    # ---- linear1 chunk + bias + ReLU (MXU, f32 accumulation) ----
    h = jnp.dot(x_ref[...], w1_ref[...], preferred_element_type=jnp.float32)
    h = jnp.maximum(h + b1_ref[...], 0.0)

    # ---- inverted dropout: mask only; the 1/keep_prob rescale is folded into the
    #      finalize step (saves a TMxTF VPU multiply per grid step) ----
    if dropout_rate > 0.0:
        keep_prob = 1.0 - float(dropout_rate)
        if use_tpu_prng:
            pltpu.prng_seed(seed_ref[0], pl.program_id(0), k)
            bits = pltpu.prng_random_bits(h.shape)
        else:
            # TODO(synk): pltpu hardware PRNG has no CPU lowering; counter hash keeps
            # the script runnable under interpret mode (mask differs from torch's RNG
            # stream but statistics / semantics match).
            bits = _hash_random_bits(h.shape, seed_ref[0], pl.program_id(0), k)
        u = _uniform_from_bits(bits)
        h = jnp.where(u < keep_prob, h, 0.0)

    # ---- linear2 partial product for this d_ff chunk (MXU, f32 accumulation) ----
    partial = jnp.dot(h.astype(w2_ref.dtype), w2_ref[...],
                      preferred_element_type=jnp.float32)

    def _epilogue(acc):
        if dropout_rate > 0.0:
            acc = acc * (1.0 / (1.0 - float(dropout_rate)))   # dropout rescale, once
        return (acc + b2_ref[...]).astype(o_ref.dtype)

    if num_ff_chunks == 1:
        o_ref[...] = _epilogue(partial)
        return

    acc_ref = o_ref if acc_into_out else scratch[0]

    @pl.when(k == 0)
    def _init():
        acc_ref[...] = partial

    @pl.when(k > 0)
    def _accumulate():
        acc_ref[...] += partial

    @pl.when(k == num_ff_chunks - 1)
    def _finalize():
        o_ref[...] = _epilogue(acc_ref[...])


# --------------------------------------------------------------------------------------
# Parameter preparation (done ONCE, outside the per-call path)
# --------------------------------------------------------------------------------------
class FFNParams(NamedTuple):
    w1: jax.Array      # [dm_p, dff_p], compute dtype
    b1: jax.Array      # [1, dff_p],   float32
    w2: jax.Array      # [dff_p, dm_p], compute dtype
    b2: jax.Array      # [1, dm_p],    float32
    d_model: int
    d_ff: int


def prepare_ffn_params(w1, b1, w2, b2, *, compute_dtype=None) -> FFNParams:
    """Pad weights to 128-multiples and cast to the compute dtype ONCE.

    w1: [d_model, d_ff], w2: [d_ff, d_model] (already transposed vs. torch.nn.Linear's
    [out, in] weight so the kernel computes x @ W).  Keeping this out of the per-call
    path avoids a full HBM read+write of the weights on every forward call.
    """
    d_model, d_ff = w1.shape
    cdtype = jnp.dtype(compute_dtype) if compute_dtype is not None else jnp.dtype(w1.dtype)
    dm_p = _round_up(d_model, 128)
    dff_p = _round_up(d_ff, 128)

    def _pad2(a, rows, cols):
        if a.shape == (rows, cols):
            return a
        return jnp.pad(a, ((0, rows - a.shape[0]), (0, cols - a.shape[1])))

    w1p = _pad2(w1.astype(cdtype), dm_p, dff_p)
    w2p = _pad2(w2.astype(cdtype), dff_p, dm_p)
    b1p = _pad2(b1.astype(jnp.float32).reshape(1, d_ff), 1, dff_p)
    b2p = _pad2(b2.astype(jnp.float32).reshape(1, d_model), 1, dm_p)
    return FFNParams(w1p, b1p, w2p, b2p, int(d_model), int(d_ff))


# --------------------------------------------------------------------------------------
# VMEM sizing / tile selection
# --------------------------------------------------------------------------------------
def _vmem_capacity_bytes():
    try:
        return int(pltpu.get_tpu_info().vmem_capacity_bytes)
    except Exception:
        return 64 * _MIB   # conservative default (v7x has 64 MiB per TensorCore)


def _vmem_estimate(tile_m, tile_ff, dm_p, dff_p, x_isz, w_isz, o_isz, use_scratch):
    b = 2 * tile_m * dm_p * x_isz            # x tile (double buffered)
    b += 2 * tile_m * dm_p * o_isz           # out tile (double buffered)
    b += 2 * dm_p * tile_ff * w_isz          # W1 chunk (double buffered)
    b += 2 * tile_ff * dm_p * w_isz          # W2 chunk (double buffered)
    b += 2 * (tile_ff + dm_p) * 4            # b1 / b2 chunks (f32, tiny)
    if use_scratch:
        b += tile_m * dm_p * 4               # f32 accumulator scratch
    b += 3 * tile_m * tile_ff * 4            # h / dropout temporaries (f32)
    return b


# --------------------------------------------------------------------------------------
# Wrapper
# --------------------------------------------------------------------------------------
def feed_forward_block(x, params: FFNParams, *, dropout_rate=0.0, seed=0,
                       tile_m=None, tile_ff=None):
    """x: [batch, seq, d_model] -> [batch, seq, d_model].

    Fused linear2(dropout(relu(linear1(x)))).  Pass dropout_rate=0.0 for eval mode
    (matches torch.nn.Dropout under .eval()).
    """
    assert 0.0 <= float(dropout_rate) < 1.0
    batch, seq, d_model = x.shape
    assert d_model == params.d_model, "x feature dim does not match params"
    dm_p, dff_p = params.w1.shape
    cdtype = jnp.dtype(params.w1.dtype)
    out_dtype = jnp.dtype(x.dtype)

    M = batch * seq
    x_isz = cdtype.itemsize
    w_isz = cdtype.itemsize
    o_isz = out_dtype.itemsize

    capacity = _vmem_capacity_bytes()
    budget = min(capacity - 24 * _MIB, int(capacity * 0.75))   # ~40 MiB v7x, ~96 MiB v5e/v6e

    # --- can the full weights stay VMEM-resident (single d_ff chunk)? ---
    probe_tm = min(256, _round_up(M, 8))
    resident = _vmem_estimate(probe_tm, dff_p, dm_p, dff_p, x_isz, w_isz, o_isz,
                              use_scratch=False) <= budget

    # --- row tile ---
    if tile_m is None:
        if M <= 256:
            tile_m = _round_up(M, 8)
        else:
            # Minimize row padding; use larger tiles when weights must be streamed so
            # the nm-fold weight re-read from HBM is amortized over more rows.
            cands = (256, 192, 128) if resident else (512, 384, 256)
            tile_m = min(cands, key=lambda t: (_round_up(M, t) - M, -t))

    # --- d_ff tile ---
    if tile_ff is None:
        if resident and _vmem_estimate(tile_m, dff_p, dm_p, dff_p, x_isz, w_isz, o_isz,
                                       use_scratch=False) <= budget:
            tile_ff = dff_p
        else:
            # Prefer >=512 (256-multiples) so the 256x256 MXU on v6e/v7x stays full
            # and per-step MXU work stays above the ~0.35us grid-step overhead.
            tile_ff = 128
            for cand in (4096, 3072, 2048, 1536, 1024, 768, 512, 384, 256, 128):
                if cand > dff_p or dff_p % cand != 0:
                    continue
                if _vmem_estimate(tile_m, cand, dm_p, dff_p, x_isz, w_isz, o_isz,
                                  use_scratch=True) <= budget:
                    tile_ff = cand
                    break
    tile_ff = min(tile_ff, dff_p)
    assert dff_p % tile_ff == 0, "tile_ff must divide the padded d_ff"

    # If even the smallest d_ff chunk does not fit (huge d_model), shrink the row tile.
    while (_vmem_estimate(tile_m, tile_ff, dm_p, dff_p, x_isz, w_isz, o_isz, True) > budget
           and tile_m > 8):
        tile_m = max(8, tile_m // 2)

    M_p = _round_up(M, tile_m)
    nm = M_p // tile_m
    nk = dff_p // tile_ff

    use_scratch = (nk > 1) and (out_dtype != jnp.dtype(jnp.float32))
    acc_into_out = (nk > 1) and not use_scratch

    # --- per-call activation prep (weights were prepared once) ---
    x2d = x.reshape(M, d_model)
    if x2d.dtype != cdtype:
        x2d = x2d.astype(cdtype)
    if (M_p, dm_p) != (M, d_model):
        # Zero padding is exact: padded d_model columns / d_ff lanes contribute nothing.
        x2d = jnp.pad(x2d, ((0, M_p - M), (0, dm_p - d_model)))
    seed_arr = jnp.asarray([seed], dtype=jnp.int32)

    use_tpu_prng = jax.default_backend() == "tpu"
    kernel = functools.partial(
        _ffn_kernel, dropout_rate=float(dropout_rate), num_ff_chunks=nk,
        acc_into_out=acc_into_out, use_tpu_prng=use_tpu_prng)

    est = _vmem_estimate(tile_m, tile_ff, dm_p, dff_p, x_isz, w_isz, o_isz, use_scratch)
    vmem_limit = int(min(capacity - 8 * _MIB, max(32 * _MIB, int(est * 1.5))))

    weight_bytes = (params.w1.size + params.w2.size) * w_isz
    cost = pl.CostEstimate(
        flops=4 * M_p * dm_p * dff_p,                       # two matmuls: 2 * 2*M*dm*dff
        transcendentals=0,
        bytes_accessed=(M_p * dm_p * (x_isz + o_isz)
                        + weight_bytes * (nm if nk > 1 else 1)   # re-streamed per row tile
                        + (params.b1.size + params.b2.size) * 4),
    )

    grid_spec = pltpu.PrefetchScalarGridSpec(
        num_scalar_prefetch=1,
        grid=(nm, nk),
        in_specs=[
            pl.BlockSpec((tile_m, dm_p), lambda i, k, s: (i, 0)),    # x
            pl.BlockSpec((dm_p, tile_ff), lambda i, k, s: (0, k)),   # W1 chunk
            pl.BlockSpec((1, tile_ff), lambda i, k, s: (0, k)),      # b1 chunk
            pl.BlockSpec((tile_ff, dm_p), lambda i, k, s: (k, 0)),   # W2 chunk
            pl.BlockSpec((1, dm_p), lambda i, k, s: (0, 0)),         # b2 (resident)
        ],
        out_specs=pl.BlockSpec((tile_m, dm_p), lambda i, k, s: (i, 0)),
        scratch_shapes=([pltpu.VMEM((tile_m, dm_p), jnp.float32)] if use_scratch else []),
    )

    out2d = pl.pallas_call(
        kernel,
        out_shape=jax.ShapeDtypeStruct((M_p, dm_p), out_dtype),
        grid_spec=grid_spec,
        compiler_params=pltpu.CompilerParams(
            dimension_semantics=("parallel", "arbitrary"),
            vmem_limit_bytes=vmem_limit),
        cost_estimate=cost,
    )(seed_arr, x2d, params.w1, params.b1, params.w2, params.b2)

    if (M_p, dm_p) != (M, d_model):
        out2d = out2d[:M, :d_model]
    return out2d.reshape(batch, seq, d_model)


# --------------------------------------------------------------------------------------
# Demo / self-test
# --------------------------------------------------------------------------------------
def _init_linear(key, fan_in, fan_out, dtype=jnp.float32):
    """PyTorch nn.Linear default init; W returned as [fan_in, fan_out] for x @ W."""
    kw, kb = jax.random.split(key)
    bound = 1.0 / (fan_in ** 0.5)
    w = jax.random.uniform(kw, (fan_in, fan_out), dtype, minval=-bound, maxval=bound)
    b = jax.random.uniform(kb, (fan_out,), dtype, minval=-bound, maxval=bound)
    return w, b


if __name__ == "__main__":
    batch, seq, d_model, d_ff = 2, 8, 32, 64

    key = jax.random.PRNGKey(0)
    kx, k1, k2 = jax.random.split(key, 3)
    x = jax.random.normal(kx, (batch, seq, d_model), jnp.float32)
    w1, b1 = _init_linear(k1, d_model, d_ff)
    w2, b2 = _init_linear(k2, d_ff, d_model)

    # Weights are padded / cast ONCE here (out of the per-call path).
    params_f32 = prepare_ffn_params(w1, b1, w2, b2)

    # 1) f32, eval mode (dropout disabled) vs. pure-JAX reference.
    out = jax.block_until_ready(feed_forward_block(x, params_f32, dropout_rate=0.0))
    ref = jnp.maximum(x @ w1 + b1, 0.0) @ w2 + b2
    assert out.shape == (batch, seq, d_model)
    assert jnp.allclose(out, ref, atol=1e-4, rtol=1e-4), "f32 mismatch vs reference"

    # 2) bf16 compute path (bf16 operands, f32 accumulation).
    params_bf16 = prepare_ffn_params(w1, b1, w2, b2, compute_dtype=jnp.bfloat16)
    out_bf16 = jax.block_until_ready(feed_forward_block(x, params_bf16, dropout_rate=0.0))
    xb = x.astype(jnp.bfloat16)
    hb = jnp.maximum(
        jnp.einsum("bsd,df->bsf", xb, w1.astype(jnp.bfloat16),
                   preferred_element_type=jnp.float32) + b1, 0.0)
    ref_bf16 = jnp.einsum("bsf,fd->bsd", hb.astype(jnp.bfloat16), w2.astype(jnp.bfloat16),
                          preferred_element_type=jnp.float32) + b2
    assert jnp.allclose(out_bf16, ref_bf16, atol=5e-2, rtol=5e-2), "bf16 mismatch"

    # 3) training mode: dropout path compiles and produces finite output.
    out_drop = jax.block_until_ready(
        feed_forward_block(x, params_f32, dropout_rate=0.1, seed=42))
    assert out_drop.shape == (batch, seq, d_model)
    assert bool(jnp.all(jnp.isfinite(out_drop)))

    print("KERNEL_OK")
</pallas_src>

<mosaic_0001>
module attributes {stable_mosaic.version = 11 : i64} {
  func.func @_ffn_kernel(%arg0: i32, %arg1: i32, %arg2: memref<1xi32, #tpu.memory_space<smem>>, %arg3: memref<16x128xf32, #tpu.memory_space<vmem>>, %arg4: memref<128x128xf32, #tpu.memory_space<vmem>>, %arg5: memref<1x128xf32, #tpu.memory_space<vmem>>, %arg6: memref<128x128xf32, #tpu.memory_space<vmem>>, %arg7: memref<1x128xf32, #tpu.memory_space<vmem>>, %arg8: memref<16x128xf32, #tpu.memory_space<vmem>>) attributes {dimension_semantics = [#tpu.dimension_semantics<parallel>, #tpu.dimension_semantics<arbitrary>], iteration_bounds = array<i64: 1, 1>, scalar_prefetch = 1 : i64, scratch_operands = 0 : i64, tpu.core_type = #tpu.core_type<tc>, window_params = [{transform_indices = @transform_0, window_bounds = array<i64: 16, 128>}, {transform_indices = @transform_1, window_bounds = array<i64: 128, 128>}, {transform_indices = @transform_2, window_bounds = array<i64: 1, 128>}, {transform_indices = @transform_3, window_bounds = array<i64: 128, 128>}, {pipeline_mode = #tpu.pipeline_mode<synchronous>, transform_indices = @transform_4, window_bounds = array<i64: 1, 128>}, {transform_indices = @transform_5, window_bounds = array<i64: 16, 128>}]} {
    %c0 = arith.constant 0 : index
    %c0_0 = arith.constant 0 : index
    %0 = vector.load %arg3[%c0, %c0_0] : memref<16x128xf32, #tpu.memory_space<vmem>>, vector<16x128xf32>
    %c0_1 = arith.constant 0 : index
    %c0_2 = arith.constant 0 : index
    %1 = vector.load %arg4[%c0_1, %c0_2] : memref<128x128xf32, #tpu.memory_space<vmem>>, vector<128x128xf32>
    %cst = arith.constant dense<0.000000e+00> : vector<16x128xf32>
    %2 = tpu.matmul %0, %1, %cst {dimension_numbers = #tpu.dot_dimension_numbers<[1], [0], [0], [1], [0, 0, 1, 1], [], []>} : vector<16x128xf32>, vector<128x128xf32>, vector<16x128xf32> -> vector<16x128xf32>
    %c0_3 = arith.constant 0 : index
    %c0_4 = arith.constant 0 : index
    %3 = vector.load %arg5[%c0_3, %c0_4] : memref<1x128xf32, #tpu.memory_space<vmem>>, vector<1x128xf32>
    %4 = vector.broadcast %3 : vector<1x128xf32> to vector<16x128xf32>
    %5 = arith.addf %2, %4 : vector<16x128xf32>
    %cst_5 = arith.constant 0.000000e+00 : f32
    %6 = vector.broadcast %cst_5 : f32 to vector<16x128xf32>
    %7 = arith.maximumf %5, %6 : vector<16x128xf32>
    %c0_6 = arith.constant 0 : index
    %c0_7 = arith.constant 0 : index
    %8 = vector.load %arg6[%c0_6, %c0_7] : memref<128x128xf32, #tpu.memory_space<vmem>>, vector<128x128xf32>
    %cst_8 = arith.constant dense<0.000000e+00> : vector<16x128xf32>
    %9 = tpu.matmul %7, %8, %cst_8 {dimension_numbers = #tpu.dot_dimension_numbers<[1], [0], [0], [1], [0, 0, 1, 1], [], []>} : vector<16x128xf32>, vector<128x128xf32>, vector<16x128xf32> -> vector<16x128xf32>
    %c0_9 = arith.constant 0 : index
    %c0_10 = arith.constant 0 : index
    %10 = vector.load %arg7[%c0_9, %c0_10] : memref<1x128xf32, #tpu.memory_space<vmem>>, vector<1x128xf32>
    %11 = vector.broadcast %10 : vector<1x128xf32> to vector<16x128xf32>
    %12 = arith.addf %9, %11 : vector<16x128xf32>
    %c0_11 = arith.constant 0 : index
    %c0_12 = arith.constant 0 : index
    %13 = vector.load %arg8[%c0_11, %c0_12] : memref<16x128xf32, #tpu.memory_space<vmem>>, vector<16x128xf32>
    tpu.vector_store %arg8[%c0_11, %c0_12], %12 {strides = array<i32>} : memref<16x128xf32, #tpu.memory_space<vmem>>, vector<16x128xf32>,
    return
  }
  func.func @transform_0(%arg0: i32, %arg1: i32, %arg2: memref<1xi32, #tpu.memory_space<smem>>) -> (i32, i32) {
    %c0_i32 = arith.constant 0 : i32
    %c0_i32_0 = arith.constant 0 : i32
    return %arg0, %c0_i32 : i32, i32
  }
  func.func @transform_1(%arg0: i32, %arg1: i32, %arg2: memref<1xi32, #tpu.memory_space<smem>>) -> (i32, i32) {
    %c0_i32 = arith.constant 0 : i32
    %c0_i32_0 = arith.constant 0 : i32
    return %c0_i32, %arg1 : i32, i32
  }
  func.func @transform_2(%arg0: i32, %arg1: i32, %arg2: memref<1xi32, #tpu.memory_space<smem>>) -> (i32, i32) {
    %c0_i32 = arith.constant 0 : i32
    %c0_i32_0 = arith.constant 0 : i32
    return %c0_i32, %arg1 : i32, i32
  }
  func.func @transform_3(%arg0: i32, %arg1: i32, %arg2: memref<1xi32, #tpu.memory_space<smem>>) -> (i32, i32) {
    %c0_i32 = arith.constant 0 : i32
    %c0_i32_0 = arith.constant 0 : i32
    return %arg1, %c0_i32 : i32, i32
  }
  func.func @transform_4(%arg0: i32, %arg1: i32, %arg2: memref<1xi32, #tpu.memory_space<smem>>) -> (i32, i32) {
    %c0_i32 = arith.constant 0 : i32
    %c0_i32_0 = arith.constant 0 : i32
    %c0_i32_1 = arith.constant 0 : i32
    return %c0_i32, %c0_i32_0 : i32, i32
  }
  func.func @transform_5(%arg0: i32, %arg1: i32, %arg2: memref<1xi32, #tpu.memory_space<smem>>) -> (i32, i32) {
    %c0_i32 = arith.constant 0 : i32
    %c0_i32_0 = arith.constant 0 : i32
    return %arg0, %c0_i32 : i32, i32
  }
}

</mosaic_0001>

<bundles_post_ra>
// kernel: tpu_custom_call.1
= control target key start
LH: loop header
LB: loop body
LE: loop exit
PB: predicated region body
PF: predicated region fallthrough
CT: control target
= control target key end

     0   :  { %12 = vsyncpa [#allocation5], 0  ;;  %s670_s0 = inlined_call_operand.<no memory space> [shape: s32[1], index: 0, kind: input, shape index: {}]   ;;  %s671_s1 = inlined_call_operand.hbm [shape: f32[16,128], index: 1, kind: input, shape index: {}]   ;;  %s672_s2 = inlined_call_operand.hbm [shape: f32[128,128], index: 2, kind: input, shape index: {}]   ;;  %s673_s3 = inlined_call_operand.vmem [shape: f32[1,128], index: 3, kind: input, shape index: {}]   ;;  %s674_s4 = inlined_call_operand.hbm [shape: f32[128,128], index: 4, kind: input, shape index: {}]   ;;  %s675_s5 = inlined_call_operand.vmem [shape: f32[1,128], index: 5, kind: input, shape index: {}]   ;;  %s676_s6 = inlined_call_operand.hbm [shape: f32[16,128], index: 6, kind: output, shape index: {}]  }
   0x1   :  { %13 = vsyncpa [#allocation8], 0 }
   0x2   :  { %14 = vsyncpa [#allocation6], 0  ;;  %s556_s0 = smov [#allocation7]   ;;  %s557_s22 = smov [#allocation4]  }
   0x3   :  { %s32_s21 = sshll.u32 %s556_s0, 4  ;;  %s20_s23 = sshll.u32 %s557_s22, 4  ;;  %s33_s21 = int_to_ptr.vmem [resolvable:$true] %s32_s21  ;;  %s597_s23 = int_to_ptr.vmem [resolvable:$true] %s20_s23 }
   0x4   :  { %s462_s26 = scalar_lea.hbm %s672_s2, 2048 }
   0x5   :  { %p463_p0 = scmp.ne.s32.totalorder %s672_s2, %s462_s26  ;;  %p466_p1 = scmp.lt.u32.totalorder %s462_s26, %s672_s2 }
   0x7   :  { %p468_p2 = pnand %p466_p1, %p463_p0 }
   0x9   :  { %471 = shalt.err (!%p468_p2)
}
   0xa   :  { %s472_s7 = scalar_lea.vmem %s33_s21, 2048  ;;  %p477_p4 = scmp.lt.s32.totalorder %s33_s21, %s33_s21 }
   0xb   :  { %p473_p3 = scmp.ne.s32.totalorder %s33_s21, %s472_s7  ;;  %p478_p5 = scmp.lt.s32.totalorder %s472_s7, %s472_s7 }
   0xd   :  { %p479_p6 = por %p478_p5, %p477_p4 }
   0xf   :  { %p480_p7 = pnand %p479_p6, %p473_p3 }
  0x11   :  { %483 = shalt.err (!%p480_p7)
}
  0x12   :  { %s558_s8 = smov 128   ;;  %s559_s9 = smov 8  }
  0x13   :  { %38 = dma.hbm_to_vmem [thread:$0]  %s672_s2, 2048, %s33_s21, [#allocation8], %s558_s8, %s558_s8, %s559_s9  }
  0x14   :  { %s484_s14 = scalar_lea.hbm %s671_s1, 256 }
  0x15   :  { %p485_p8 = scmp.ne.s32.totalorder %s671_s1, %s484_s14  ;;  %p488_p9 = scmp.lt.u32.totalorder %s484_s14, %s671_s1 }
  0x17   :  { %p490_p10 = pnand %p488_p9, %p485_p8 }
  0x19   :  { %493 = shalt.err (!%p490_p10)
}
  0x1a   :  { %s494_s19 = scalar_lea.vmem %s597_s23, 256  ;;  %p499_p12 = scmp.lt.s32.totalorder %s597_s23, %s597_s23 }
  0x1b   :  { %p495_p11 = scmp.ne.s32.totalorder %s597_s23, %s494_s19  ;;  %p500_p13 = scmp.lt.s32.totalorder %s494_s19, %s494_s19 }
  0x1d   :  { %p501_p0 = por %p500_p13, %p499_p12 }
  0x1f   :  { %p502_p1 = pnand %p501_p0, %p495_p11 }
  0x21   :  { %505 = shalt.err (!%p502_p1)
}
  0x22   :  { %26 = dma.hbm_to_vmem [thread:$0]  %s671_s1, 256, %s597_s23, [#allocation5], %s558_s8, %s558_s8, %s559_s9  }
  0x23   :  { %s560_s0 = smov [#allocation9]   ;;  %s506_s25 = scalar_lea.hbm %s674_s4, 2048 }
  0x24   :  { %s46_s21 = sshll.u32 %s560_s0, 4  ;;  %p507_p2 = scmp.ne.s32.totalorder %s674_s4, %s506_s25  ;;  %s47_s21 = int_to_ptr.vmem [resolvable:$true] %s46_s21 }
  0x25   :  { %p510_p3 = scmp.lt.u32.totalorder %s506_s25, %s674_s4 }
  0x27   :  { %p512_p4 = pnand %p510_p3, %p507_p2 }
  0x29   :  { %515 = shalt.err (!%p512_p4)
}
  0x2a   :  { %s516_s30 = scalar_lea.vmem %s47_s21, 2048  ;;  %p521_p6 = scmp.lt.s32.totalorder %s47_s21, %s47_s21 }
  0x2b   :  { %p517_p5 = scmp.ne.s32.totalorder %s47_s21, %s516_s30  ;;  %p522_p7 = scmp.lt.s32.totalorder %s516_s30, %s516_s30 }
  0x2d   :  { %p523_p8 = por %p522_p7, %p521_p6 }
  0x2f   :  { %p524_p9 = pnand %p523_p8, %p517_p5 }
  0x31   :  { %527 = shalt.err (!%p524_p9)
}
  0x32   :  { %52 = dma.hbm_to_vmem [thread:$0]  %s674_s4, 2048, %s47_s21, [#allocation8], %s558_s8, %s558_s8, %s559_s9  }
  0x33   :  { %550 = dma.done.wait [#allocation5], 256  }
  0x34   :  { %551 = vsyncadd [#allocation5], 4294967040 }
  0x35   :  { %552 = dma.done.wait [#allocation8], 4096  }
  0x36   :  { %553 = vsyncadd [#allocation8], 4294963200  ;;  %v66_v0 = vld [vmem:[#allocation7] sm:$0xff]  ;;  %v67_v1 = vld [vmem:[#allocation7 + $0x8] sm:$0xff]  ;;  %s561_s12 = smov [#allocation10]  }
  0x37   :  { %v68_v2 = vld [vmem:[#allocation7 + $0x10] sm:$0xff]  ;;  %v392_v3 = vpack.c.bf16 %v67_v1, %v66_v0  ;;  %v69_v4 = vld [vmem:[#allocation7 + $0x18] sm:$0xff]  ;;  %v70_v6 = vld [vmem:[#allocation7 + $0x20] sm:$0xff]  ;;  %s271_s13 = sshll.u32 %s561_s12, 4  ;;  %s272_s13 = int_to_ptr.vmem [resolvable:$true] %s271_s13 }
  0x38   :  { %v396_v5 = vpack.c.bf16 %v69_v4, %v68_v2  ;;  %v71_v7 = vld [vmem:[#allocation7 + $0x28] sm:$0xff]  ;;  %v72_v9 = vld [vmem:[#allocation7 + $0x30] sm:$0xff]  ;;  %v73_v10 = vld [vmem:[#allocation7 + $0x38] sm:$0xff]  ;;  %p533_p11 = scmp.lt.s32.totalorder %s272_s13, %s272_s13 }
  0x39   :  { %393 = vmatprep.subr.bf16.mxu0 %v392_v3  ;;  %v400_v8 = vpack.c.bf16 %v71_v7, %v70_v6  ;;  %v64_v11 = vld [vmem:[#allocation4] sm:$0xff]  ;;  %v166_v12 = vld [vmem:[#allocation9] sm:$0xff]  ;;  %v167_v13 = vld [vmem:[#allocation9 + $0x8] sm:$0xff]  ;;  %v404_v20 = vpack.c.bf16 %v73_v10, %v72_v9 }
  0x3a   :  { %395 = vmatpush3.bf16.msra.mxu0 %v392_v3  ;;  %354 = vmatprep.mubr.f32.mxu0 %v64_v11  ;;  %v168_v14 = vld [vmem:[#allocation9 + $0x10] sm:$0xff]  ;;  %v424_v15 = vpack.c.bf16 %v167_v13, %v166_v12  ;;  %v169_v16 = vld [vmem:[#allocation9 + $0x18] sm:$0xff]  ;;  %v170_v18 = vld [vmem:[#allocation9 + $0x20] sm:$0xff] }
  0x3b   :  { %397 = vmatprep.subr.bf16.mxu0 %v396_v5  ;;  %v428_v17 = vpack.c.bf16 %v169_v16, %v168_v14  ;;  %v171_v19 = vld [vmem:[#allocation9 + $0x28] sm:$0xff]  ;;  %v74_v21 = vld [vmem:[#allocation7 + $0x40] sm:$0xff]  ;;  %v172_v24 = vld [vmem:[#allocation9 + $0x30] sm:$0xff] }
  0x3c   :  { %425 = vmatprep.subr.bf16.mxu1 %v424_v15  ;;  %v75_v22 = vld [vmem:[#allocation7 + $0x48] sm:$0xff]  ;;  %v432_v23 = vpack.c.bf16 %v171_v19, %v170_v18  ;;  %v173_v25 = vld [vmem:[#allocation9 + $0x38] sm:$0xff]  ;;  %v76_v27 = vld [vmem:[#allocation7 + $0x50] sm:$0xff] }
  0x3d   :  { %427 = vmatpush3.bf16.msra.mxu1 %v424_v15  ;;  %v408_v26 = vpack.c.bf16 %v75_v22, %v74_v21  ;;  %v77_v28 = vld [vmem:[#allocation7 + $0x58] sm:$0xff]  ;;  %v436_v29 = vpack.c.bf16 %v173_v25, %v172_v24  ;;  %v174_v30 = vld [vmem:[#allocation9 + $0x40] sm:$0xff]  ;;  %v175_v31 = vld [vmem:[#allocation9 + $0x48] sm:$0xff] }
  0x3e   :  { %399 = vmatpush3.bf16.msra.mxu0 %v396_v5  ;;  %429 = vmatprep.subr.bf16.mxu1 %v428_v17  ;;  %v412_v32 = vpack.c.bf16 %v77_v28, %v76_v27  ;;  %v78_v33 = vld [vmem:[#allocation7 + $0x60] sm:$0xff]  ;;  %v79_v34 = vld [vmem:[#allocation7 + $0x68] sm:$0xff]  ;;  %v440_v35 = vpack.c.bf16 %v175_v31, %v174_v30  ;;  %v176_v36 = vld [vmem:[#allocation9 + $0x50] sm:$0xff] }
  0x3f   :  { %401 = vmatprep.subr.bf16.mxu0 %v400_v8  ;;  %v177_v37 = vld [vmem:[#allocation9 + $0x58] sm:$0xff]  ;;  %v416_v38 = vpack.c.bf16 %v79_v34, %v78_v33  ;;  %v80_v39 = vld [vmem:[#allocation7 + $0x70] sm:$0xff]  ;;  %v178_v42 = vld [vmem:[#allocation9 + $0x60] sm:$0xff] }
  0x40   :  { %v81_v40 = vld [vmem:[#allocation7 + $0x78] sm:$0xff]  ;;  %v444_v41 = vpack.c.bf16 %v177_v37, %v176_v36  ;;  %v179_v43 = vld [vmem:[#allocation9 + $0x68] sm:$0xff]  ;;  %v180_v47 = vld [vmem:[#allocation9 + $0x70] sm:$0xff] }
  0x41   :  { %431 = vmatpush3.bf16.msra.mxu1 %v428_v17  ;;  %v420_v44 = vpack.c.bf16 %v81_v40, %v80_v39  ;;  %v448_v45 = vpack.c.bf16 %v179_v43, %v178_v42  ;;  %v65_v46 = vld [vmem:[#allocation4 + $0x8] sm:$0xff]  ;;  %v284_v50 = vld [vmem:[%s673_s3] ss:$0 sm:$0xff]  ;;  %s528_s3 = scalar_lea.vmem %s272_s13, 256 }
  0x42   :  { %403 = vmatpush3.bf16.msra.mxu0 %v400_v8  ;;  %433 = vmatprep.subr.bf16.mxu1 %v432_v23  ;;  %v181_v48 = vld [vmem:[#allocation9 + $0x78] sm:$0xff]  ;;  %v285_v57 = vld [vmem:[%s675_s5] ss:$0 sm:$0xff]  ;;  %p529_p10 = scmp.ne.s32.totalorder %s272_s13, %s528_s3  ;;  %p534_p12 = scmp.lt.s32.totalorder %s528_s3, %s528_s3 }
  0x43   :  { %405 = vmatprep.subr.bf16.mxu0 %v404_v20  ;;  %v452_v49 = vpack.c.bf16 %v181_v48, %v180_v47 }
  0x44   :  { %p535_p13 = por %p534_p12, %p533_p11 }
  0x45   :  { %435 = vmatpush3.bf16.msra.mxu1 %v432_v23 }
  0x46   :  { %407 = vmatpush3.bf16.msra.mxu0 %v404_v20  ;;  %437 = vmatprep.subr.bf16.mxu1 %v436_v29  ;;  %p536_p0 = pnand %p535_p13, %p529_p10 }
  0x47   :  { %409 = vmatprep.subr.bf16.mxu0 %v408_v26 }
  0x49   :  { %439 = vmatpush3.bf16.msra.mxu1 %v436_v29 }
  0x4a   :  { %411 = vmatpush3.bf16.msra.mxu0 %v408_v26  ;;  %441 = vmatprep.subr.bf16.mxu1 %v440_v35 }
  0x4b   :  { %413 = vmatprep.subr.bf16.mxu0 %v412_v32 }
  0x4d   :  { %443 = vmatpush3.bf16.msra.mxu1 %v440_v35 }
  0x4e   :  { %415 = vmatpush3.bf16.msra.mxu0 %v412_v32  ;;  %445 = vmatprep.subr.bf16.mxu1 %v444_v41 }
  0x4f   :  { %417 = vmatprep.subr.bf16.mxu0 %v416_v38 }
  0x51   :  { %447 = vmatpush3.bf16.msra.mxu1 %v444_v41 }
  0x52   :  { %419 = vmatpush3.bf16.msra.mxu0 %v416_v38  ;;  %449 = vmatprep.subr.bf16.mxu1 %v448_v45 }
  0x53   :  { %421 = vmatprep.subr.bf16.mxu0 %v420_v44 }
  0x55   :  { %451 = vmatpush3.bf16.msra.mxu1 %v448_v45 }
  0x56   :  { %423 = vmatpush3.bf16.msra.mxu0 %v420_v44  ;;  %453 = vmatprep.subr.bf16.mxu1 %v452_v49 }
  0x59   :  { %355 = vmatmul.mubr.f32.vlgmr.msra.gmra.mrb[0].mxu0 %v65_v46  ;;  %455 = vmatpush3.bf16.msra.mxu1 %v452_v49 }
 0x12c   :  { %v356_v51 = vpop.f32.mrb[0].mxu0 }
 0x12d   :  { %v161_v52 = vadd.f32 %v356_v51, %v284_v50  ;;  %v155_v53 = vpop.f32.mrb[1].mxu0 }
 0x12e   :  { %v156_v54 = vadd.f32 %v284_v50, %v155_v53 }
 0x12f   :  { %v165_v56 = vmax.f32 %v161_v52, 0.0 }
 0x130   :  { %v164_v55 = vmax.f32 %v156_v54, 0.0 }
 0x132   :  { %389 = vmatprep.mubr.f32.mxu1 %v164_v55 }
 0x133   :  { %390 = vmatmul.mubr.f32.vlgmr.msra.gmra.mrb[0].mxu1 %v165_v56 }
 0x206   :  { %v391_v58 = vpop.f32.mrb[0].mxu1 }
 0x207   :  { %v261_v59 = vadd.f32 %v391_v58, %v285_v57  ;;  %v255_v60 = vpop.f32.mrb[1].mxu1 }
 0x208   :  { %v256_v61 = vadd.f32 %v285_v57, %v255_v60 }
 0x209   :  { %265 = vst [vmem:[#allocation10 + $0x8] sm:$0xff] %v261_v59 }
 0x20a   :  { %264 = vst [vmem:[#allocation10] sm:$0xff] %v256_v61 }
 0x20b   :  { %539 = shalt.err (!%p536_p0)
}
 0x20c   :  { %s540_s5 = scalar_lea.hbm %s676_s6, 256 }
 0x20d   :  { %p541_p1 = scmp.ne.s32.totalorder %s676_s6, %s540_s5  ;;  %p544_p2 = scmp.lt.u32.totalorder %s540_s5, %s676_s6 }
 0x20f   :  { %p546_p3 = pnand %p544_p2, %p541_p1 }
 0x211   :  { %549 = shalt.err (!%p546_p3)
}
 0x212   :  { %277 = dma.vmem_to_hbm [thread:$0]  %s272_s13, 256, %s676_s6, [#allocation6], %s558_s8, %s558_s8, %s559_s9  }
 0x213   :  { %554 = dma.done.wait [#allocation6], 256  }
 0x214   :  { %555 = vsyncadd [#allocation6], 4294967040 }
 0x215   :  { %281 = vsyncpa [#allocation5], 1 }
 0x216   :  { %282 = vsyncpa [#allocation8], 1 }
 0x217   :  { %283 = vsyncpa [#allocation6], 1 }

</bundles_post_ra>
